<compile_context>
chip_gen: v7x
topology: tpu7x:2x2x1
jax: 0.10.0
libtpu: 0.0.40
codegen_flags: <defaults>
</compile_context>

<pallas_src>
import jax
import jax.numpy as jnp
from jax.experimental import pallas as pl
from jax.experimental.pallas import tpu as pltpu

STATE_DIM = 24            # BipedalWalker-v3 observation_space.shape[0]
H1, H2, H3, OUT = 512, 256, 128, 1
PAD_OUT = 128             # fc4 output padded 1 -> 128 (lane dim)
TB_MAX = 256              # batch tile


def _round_up(x, m):
    return ((x + m - 1) // m) * m


def _critic_kernel(x_ref,
                   w1_ref, b1_ref,
                   w2_ref, b2_ref,
                   w3_ref, b3_ref,
                   w4_ref, b4_ref,
                   o_ref):
    # fc1 + relu   (bf16 MXU, f32 accumulate; elementwise in f32)
    x = x_ref[...].astype(jnp.bfloat16)
    h = jnp.dot(x, w1_ref[...], preferred_element_type=jnp.float32)
    h = jnp.maximum(h + b1_ref[...], 0.0)
    # fc2 + relu
    h = jnp.dot(h.astype(jnp.bfloat16), w2_ref[...],
                preferred_element_type=jnp.float32)
    h = jnp.maximum(h + b2_ref[...], 0.0)
    # fc3 + relu
    h = jnp.dot(h.astype(jnp.bfloat16), w3_ref[...],
                preferred_element_type=jnp.float32)
    h = jnp.maximum(h + b3_ref[...], 0.0)
    # fc4 (no activation)
    h = jnp.dot(h.astype(jnp.bfloat16), w4_ref[...],
                preferred_element_type=jnp.float32)
    o_ref[...] = h + b4_ref[...]


def init_params(key):
    """Matches init.normal_(mean=0, std=1) for all weights & biases (PyTorch layout)."""
    ks = jax.random.split(key, 8)
    w1 = jax.random.normal(ks[0], (H1, STATE_DIM), jnp.float32)
    b1 = jax.random.normal(ks[1], (H1,), jnp.float32)
    w2 = jax.random.normal(ks[2], (H2, H1), jnp.float32)
    b2 = jax.random.normal(ks[3], (H2,), jnp.float32)
    w3 = jax.random.normal(ks[4], (H3, H2), jnp.float32)
    b3 = jax.random.normal(ks[5], (H3,), jnp.float32)
    w4 = jax.random.normal(ks[6], (OUT, H3), jnp.float32)
    b4 = jax.random.normal(ks[7], (OUT,), jnp.float32)
    return ((w1, b1), (w2, b2), (w3, b3), (w4, b4))


def prepare_params(params):
    """One-time weight staging: transpose to (in, out), pad fc4 out-dim, cast to bf16."""
    (w1, b1), (w2, b2), (w3, b3), (w4, b4) = params
    w1_p = w1.T.astype(jnp.bfloat16)                                    # (24, 512)
    w2_p = w2.T.astype(jnp.bfloat16)                                    # (512, 256)
    w3_p = w3.T.astype(jnp.bfloat16)                                    # (256, 128)
    w4_p = jnp.pad(w4.T, ((0, 0), (0, PAD_OUT - OUT))).astype(jnp.bfloat16)  # (128, 128)
    b1_p = b1.reshape(1, H1).astype(jnp.float32)
    b2_p = b2.reshape(1, H2).astype(jnp.float32)
    b3_p = b3.reshape(1, H3).astype(jnp.float32)
    b4_p = jnp.pad(b4.reshape(1, OUT),
                   ((0, 0), (0, PAD_OUT - OUT))).astype(jnp.float32)    # (1, 128)
    return (w1_p, b1_p, w2_p, b2_p, w3_p, b3_p, w4_p, b4_p)


def critic_forward(state, prepped):
    """state: (B, STATE_DIM) float32 -> (B, 1) float32."""
    w1_p, b1_p, w2_p, b2_p, w3_p, b3_p, w4_p, b4_p = prepped
    B = state.shape[0]
    tb = TB_MAX if B >= TB_MAX else _round_up(B, 8)
    Bp = _round_up(B, tb)
    n_tiles = Bp // tb

    x_p = state.astype(jnp.float32)
    if Bp != B:
        x_p = jnp.pad(x_p, ((0, Bp - B), (0, 0)))

    flops = 2 * Bp * (STATE_DIM * H1 + H1 * H2 + H2 * H3 + H3 * PAD_OUT)
    weight_bytes = 2 * (STATE_DIM * H1 + H1 * H2 + H2 * H3 + H3 * PAD_OUT)
    bias_bytes = 4 * (H1 + H2 + H3 + PAD_OUT)
    bytes_accessed = weight_bytes + bias_bytes + 4 * Bp * STATE_DIM + 4 * Bp * PAD_OUT

    out_p = pl.pallas_call(
        _critic_kernel,
        out_shape=jax.ShapeDtypeStruct((Bp, PAD_OUT), jnp.float32),
        grid_spec=pl.GridSpec(
            grid=(n_tiles,),
            in_specs=[
                pl.BlockSpec((tb, STATE_DIM), lambda i: (i, 0)),   # x tile
                pl.BlockSpec((STATE_DIM, H1), lambda i: (0, 0)),   # w1 (resident)
                pl.BlockSpec((1, H1), lambda i: (0, 0)),           # b1
                pl.BlockSpec((H1, H2), lambda i: (0, 0)),          # w2
                pl.BlockSpec((1, H2), lambda i: (0, 0)),           # b2
                pl.BlockSpec((H2, H3), lambda i: (0, 0)),          # w3
                pl.BlockSpec((1, H3), lambda i: (0, 0)),           # b3
                pl.BlockSpec((H3, PAD_OUT), lambda i: (0, 0)),     # w4
                pl.BlockSpec((1, PAD_OUT), lambda i: (0, 0)),      # b4
            ],
            out_specs=pl.BlockSpec((tb, PAD_OUT), lambda i: (i, 0)),
        ),
        compiler_params=pltpu.CompilerParams(
            dimension_semantics=("parallel",)),
        cost_estimate=pl.CostEstimate(
            flops=flops, transcendentals=0, bytes_accessed=bytes_accessed),
    )(x_p, w1_p, b1_p, w2_p, b2_p, w3_p, b3_p, w4_p, b4_p)

    return out_p[:B, :OUT]


def _reference(state, params):
    """Exact f32 PyTorch-equivalent forward."""
    (w1, b1), (w2, b2), (w3, b3), (w4, b4) = params
    x = jnp.maximum(state @ w1.T + b1, 0.0)
    x = jnp.maximum(x @ w2.T + b2, 0.0)
    x = jnp.maximum(x @ w3.T + b3, 0.0)
    return x @ w4.T + b4


if __name__ == "__main__":
    key = jax.random.PRNGKey(0)
    pkey, xkey = jax.random.split(key)
    params = init_params(pkey)
    prepped = prepare_params(params)          # one-time weight staging

    B = 4
    state = jax.random.normal(xkey, (B, STATE_DIM), jnp.float32)

    out = critic_forward(state, prepped)
    out = jax.block_until_ready(out)

    ref = _reference(state, params)
    assert out.shape == (B, 1), out.shape
    # bf16 matmul inputs (f32 accumulate) through 4 layers => compare with a
    # relative tolerance on the output scale instead of tight elementwise tol.
    rel_err = jnp.max(jnp.abs(out - ref)) / (jnp.max(jnp.abs(ref)) + 1e-6)
    assert float(rel_err) < 5e-2, float(rel_err)

    print("KERNEL_OK")
</pallas_src>

<mosaic_0001>
module attributes {stable_mosaic.version = 11 : i64} {
  func.func @_critic_kernel(%arg0: i32, %arg1: memref<8x24xf32, #tpu.memory_space<vmem>>, %arg2: memref<24x512xbf16, #tpu.memory_space<vmem>>, %arg3: memref<1x512xf32, #tpu.memory_space<vmem>>, %arg4: memref<512x256xbf16, #tpu.memory_space<vmem>>, %arg5: memref<1x256xf32, #tpu.memory_space<vmem>>, %arg6: memref<256x128xbf16, #tpu.memory_space<vmem>>, %arg7: memref<1x128xf32, #tpu.memory_space<vmem>>, %arg8: memref<128x128xbf16, #tpu.memory_space<vmem>>, %arg9: memref<1x128xf32, #tpu.memory_space<vmem>>, %arg10: memref<8x128xf32, #tpu.memory_space<vmem>>) attributes {dimension_semantics = [#tpu.dimension_semantics<parallel>], iteration_bounds = array<i64: 1>, scalar_prefetch = 0 : i64, scratch_operands = 0 : i64, tpu.core_type = #tpu.core_type<tc>, window_params = [{transform_indices = @transform_0, window_bounds = array<i64: 8, 24>}, {pipeline_mode = #tpu.pipeline_mode<synchronous>, transform_indices = @transform_1, window_bounds = array<i64: 24, 512>}, {pipeline_mode = #tpu.pipeline_mode<synchronous>, transform_indices = @transform_2, window_bounds = array<i64: 1, 512>}, {pipeline_mode = #tpu.pipeline_mode<synchronous>, transform_indices = @transform_3, window_bounds = array<i64: 512, 256>}, {pipeline_mode = #tpu.pipeline_mode<synchronous>, transform_indices = @transform_4, window_bounds = array<i64: 1, 256>}, {pipeline_mode = #tpu.pipeline_mode<synchronous>, transform_indices = @transform_5, window_bounds = array<i64: 256, 128>}, {pipeline_mode = #tpu.pipeline_mode<synchronous>, transform_indices = @transform_6, window_bounds = array<i64: 1, 128>}, {pipeline_mode = #tpu.pipeline_mode<synchronous>, transform_indices = @transform_7, window_bounds = array<i64: 128, 128>}, {pipeline_mode = #tpu.pipeline_mode<synchronous>, transform_indices = @transform_8, window_bounds = array<i64: 1, 128>}, {transform_indices = @transform_9, window_bounds = array<i64: 8, 128>}]} {
    %c0 = arith.constant 0 : index
    %c0_0 = arith.constant 0 : index
    %0 = vector.load %arg1[%c0, %c0_0] : memref<8x24xf32, #tpu.memory_space<vmem>>, vector<8x24xf32>
    %1 = arith.truncf %0 : vector<8x24xf32> to vector<8x24xbf16>
    %c0_1 = arith.constant 0 : index
    %c0_2 = arith.constant 0 : index
    %2 = vector.load %arg2[%c0_1, %c0_2] : memref<24x512xbf16, #tpu.memory_space<vmem>>, vector<24x512xbf16>
    %cst = arith.constant dense<0.000000e+00> : vector<8x512xf32>
    %3 = tpu.matmul %1, %2, %cst {dimension_numbers = #tpu.dot_dimension_numbers<[1], [0], [0], [1], [0, 0, 1, 1], [], []>} : vector<8x24xbf16>, vector<24x512xbf16>, vector<8x512xf32> -> vector<8x512xf32>
    %c0_3 = arith.constant 0 : index
    %c0_4 = arith.constant 0 : index
    %4 = vector.load %arg3[%c0_3, %c0_4] : memref<1x512xf32, #tpu.memory_space<vmem>>, vector<1x512xf32>
    %5 = vector.broadcast %4 : vector<1x512xf32> to vector<8x512xf32>
    %6 = arith.addf %3, %5 : vector<8x512xf32>
    %cst_5 = arith.constant 0.000000e+00 : f32
    %7 = vector.broadcast %cst_5 : f32 to vector<8x512xf32>
    %8 = arith.maximumf %6, %7 : vector<8x512xf32>
    %9 = arith.truncf %8 : vector<8x512xf32> to vector<8x512xbf16>
    %c0_6 = arith.constant 0 : index
    %c0_7 = arith.constant 0 : index
    %10 = vector.load %arg4[%c0_6, %c0_7] : memref<512x256xbf16, #tpu.memory_space<vmem>>, vector<512x256xbf16>
    %cst_8 = arith.constant dense<0.000000e+00> : vector<8x256xf32>
    %11 = tpu.matmul %9, %10, %cst_8 {dimension_numbers = #tpu.dot_dimension_numbers<[1], [0], [0], [1], [0, 0, 1, 1], [], []>} : vector<8x512xbf16>, vector<512x256xbf16>, vector<8x256xf32> -> vector<8x256xf32>
    %c0_9 = arith.constant 0 : index
    %c0_10 = arith.constant 0 : index
    %12 = vector.load %arg5[%c0_9, %c0_10] : memref<1x256xf32, #tpu.memory_space<vmem>>, vector<1x256xf32>
    %13 = vector.broadcast %12 : vector<1x256xf32> to vector<8x256xf32>
    %14 = arith.addf %11, %13 : vector<8x256xf32>
    %cst_11 = arith.constant 0.000000e+00 : f32
    %15 = vector.broadcast %cst_11 : f32 to vector<8x256xf32>
    %16 = arith.maximumf %14, %15 : vector<8x256xf32>
    %17 = arith.truncf %16 : vector<8x256xf32> to vector<8x256xbf16>
    %c0_12 = arith.constant 0 : index
    %c0_13 = arith.constant 0 : index
    %18 = vector.load %arg6[%c0_12, %c0_13] : memref<256x128xbf16, #tpu.memory_space<vmem>>, vector<256x128xbf16>
    %cst_14 = arith.constant dense<0.000000e+00> : vector<8x128xf32>
    %19 = tpu.matmul %17, %18, %cst_14 {dimension_numbers = #tpu.dot_dimension_numbers<[1], [0], [0], [1], [0, 0, 1, 1], [], []>} : vector<8x256xbf16>, vector<256x128xbf16>, vector<8x128xf32> -> vector<8x128xf32>
    %c0_15 = arith.constant 0 : index
    %c0_16 = arith.constant 0 : index
    %20 = vector.load %arg7[%c0_15, %c0_16] : memref<1x128xf32, #tpu.memory_space<vmem>>, vector<1x128xf32>
    %21 = vector.broadcast %20 : vector<1x128xf32> to vector<8x128xf32>
    %22 = arith.addf %19, %21 : vector<8x128xf32>
    %cst_17 = arith.constant 0.000000e+00 : f32
    %23 = vector.broadcast %cst_17 : f32 to vector<8x128xf32>
    %24 = arith.maximumf %22, %23 : vector<8x128xf32>
    %25 = arith.truncf %24 : vector<8x128xf32> to vector<8x128xbf16>
    %c0_18 = arith.constant 0 : index
    %c0_19 = arith.constant 0 : index
    %26 = vector.load %arg8[%c0_18, %c0_19] : memref<128x128xbf16, #tpu.memory_space<vmem>>, vector<128x128xbf16>
    %cst_20 = arith.constant dense<0.000000e+00> : vector<8x128xf32>
    %27 = tpu.matmul %25, %26, %cst_20 {dimension_numbers = #tpu.dot_dimension_numbers<[1], [0], [0], [1], [0, 0, 1, 1], [], []>} : vector<8x128xbf16>, vector<128x128xbf16>, vector<8x128xf32> -> vector<8x128xf32>
    %c0_21 = arith.constant 0 : index
    %c0_22 = arith.constant 0 : index
    %28 = vector.load %arg9[%c0_21, %c0_22] : memref<1x128xf32, #tpu.memory_space<vmem>>, vector<1x128xf32>
    %29 = vector.broadcast %28 : vector<1x128xf32> to vector<8x128xf32>
    %30 = arith.addf %27, %29 : vector<8x128xf32>
    %c0_23 = arith.constant 0 : index
    %c0_24 = arith.constant 0 : index
    %31 = vector.load %arg10[%c0_23, %c0_24] : memref<8x128xf32, #tpu.memory_space<vmem>>, vector<8x128xf32>
    tpu.vector_store %arg10[%c0_23, %c0_24], %30 {strides = array<i32>} : memref<8x128xf32, #tpu.memory_space<vmem>>, vector<8x128xf32>,
    return
  }
  func.func @transform_0(%arg0: i32) -> (i32, i32) {
    %c0_i32 = arith.constant 0 : i32
    %c0_i32_0 = arith.constant 0 : i32
    return %arg0, %c0_i32 : i32, i32
  }
  func.func @transform_1(%arg0: i32) -> (i32, i32) {
    %c0_i32 = arith.constant 0 : i32
    %c0_i32_0 = arith.constant 0 : i32
    %c0_i32_1 = arith.constant 0 : i32
    return %c0_i32, %c0_i32_0 : i32, i32
  }
  func.func @transform_2(%arg0: i32) -> (i32, i32) {
    %c0_i32 = arith.constant 0 : i32
    %c0_i32_0 = arith.constant 0 : i32
    %c0_i32_1 = arith.constant 0 : i32
    return %c0_i32, %c0_i32_0 : i32, i32
  }
  func.func @transform_3(%arg0: i32) -> (i32, i32) {
    %c0_i32 = arith.constant 0 : i32
    %c0_i32_0 = arith.constant 0 : i32
    %c0_i32_1 = arith.constant 0 : i32
    return %c0_i32, %c0_i32_0 : i32, i32
  }
  func.func @transform_4(%arg0: i32) -> (i32, i32) {
    %c0_i32 = arith.constant 0 : i32
    %c0_i32_0 = arith.constant 0 : i32
    %c0_i32_1 = arith.constant 0 : i32
    return %c0_i32, %c0_i32_0 : i32, i32
  }
  func.func @transform_5(%arg0: i32) -> (i32, i32) {
    %c0_i32 = arith.constant 0 : i32
    %c0_i32_0 = arith.constant 0 : i32
    %c0_i32_1 = arith.constant 0 : i32
    return %c0_i32, %c0_i32_0 : i32, i32
  }
  func.func @transform_6(%arg0: i32) -> (i32, i32) {
    %c0_i32 = arith.constant 0 : i32
    %c0_i32_0 = arith.constant 0 : i32
    %c0_i32_1 = arith.constant 0 : i32
    return %c0_i32, %c0_i32_0 : i32, i32
  }
  func.func @transform_7(%arg0: i32) -> (i32, i32) {
    %c0_i32 = arith.constant 0 : i32
    %c0_i32_0 = arith.constant 0 : i32
    %c0_i32_1 = arith.constant 0 : i32
    return %c0_i32, %c0_i32_0 : i32, i32
  }
  func.func @transform_8(%arg0: i32) -> (i32, i32) {
    %c0_i32 = arith.constant 0 : i32
    %c0_i32_0 = arith.constant 0 : i32
    %c0_i32_1 = arith.constant 0 : i32
    return %c0_i32, %c0_i32_0 : i32, i32
  }
  func.func @transform_9(%arg0: i32) -> (i32, i32) {
    %c0_i32 = arith.constant 0 : i32
    %c0_i32_0 = arith.constant 0 : i32
    return %arg0, %c0_i32 : i32, i32
  }
}

</mosaic_0001>

<bundles_post_ra>
// kernel: tpu_custom_call.1
= control target key start
LH: loop header
LB: loop body
LE: loop exit
PB: predicated region body
PF: predicated region fallthrough
CT: control target
= control target key end

     0   :  { %14 = vsyncpa [#allocation3], 0  ;;  %s1690_s0 = inlined_call_operand.hbm [shape: f32[8,24], index: 0, kind: input, shape index: {}]   ;;  %s1691_s1 = inlined_call_operand.hbm [shape: bf16[24,512], index: 1, kind: input, shape index: {}]   ;;  %s1692_s2 = inlined_call_operand.vmem [shape: f32[1,512], index: 2, kind: input, shape index: {}]   ;;  %s1693_s3 = inlined_call_operand.hbm [shape: bf16[512,256], index: 3, kind: input, shape index: {}]   ;;  %s1694_s4 = inlined_call_operand.vmem [shape: f32[1,256], index: 4, kind: input, shape index: {}]   ;;  %s1695_s5 = inlined_call_operand.hbm [shape: bf16[256,128], index: 5, kind: input, shape index: {}]   ;;  %s1696_s6 = inlined_call_operand.vmem [shape: f32[1,128], index: 6, kind: input, shape index: {}]   ;;  %s1697_s7 = inlined_call_operand.hbm [shape: bf16[128,128], index: 7, kind: input, shape index: {}]   ;;  %s1698_s8 = inlined_call_operand.vmem [shape: f32[1,128], index: 8, kind: input, shape index: {}]   ;;  %s1699_s9 = inlined_call_operand.hbm [shape: f32[8,128], index: 9, kind: output, shape index: {}]  }
   0x1   :  { %15 = vsyncpa [#allocation6], 0 }
   0x2   :  { %16 = vsyncpa [#allocation9], 0 }
   0x3   :  { %17 = vsyncpa [#allocation4], 0  ;;  %s1499_s30 = smov [#allocation5]   ;;  %s1359_s13 = scalar_lea.hbm %s1691_s1, 768 }
   0x4   :  { %s33_s10 = sshll.u32 %s1499_s30, 4  ;;  %p1360_p0 = scmp.ne.s32.totalorder %s1691_s1, %s1359_s13  ;;  %s34_s10 = int_to_ptr.vmem [resolvable:$true] %s33_s10 }
   0x5   :  { %p1363_p1 = scmp.lt.u32.totalorder %s1359_s13, %s1691_s1 }
   0x7   :  { %p1365_p2 = pnand %p1363_p1, %p1360_p0 }
   0x9   :  { %1368 = shalt.err (!%p1365_p2)
}
   0xa   :  { %s1369_s18 = scalar_lea.vmem %s34_s10, 768  ;;  %p1374_p4 = scmp.lt.s32.totalorder %s34_s10, %s34_s10 }
   0xb   :  { %p1370_p3 = scmp.ne.s32.totalorder %s34_s10, %s1369_s18  ;;  %p1375_p5 = scmp.lt.s32.totalorder %s1369_s18, %s1369_s18 }
   0xd   :  { %p1376_p6 = por %p1375_p5, %p1374_p4 }
   0xf   :  { %p1377_p7 = pnand %p1376_p6, %p1370_p3 }
  0x11   :  { %1380 = shalt.err (!%p1377_p7)
}
  0x12   :  { %s1500_s19 = smov 256   ;;  %s1501_s20 = smov 16  }
  0x13   :  { %39 = dma.hbm_to_vmem [thread:$0]  %s1691_s1, 768, %s34_s10, [#allocation6], %s1500_s19, %s1500_s19, %s1501_s20  }
  0x14   :  { %s1502_s23 = smov [#allocation8]   ;;  %s1381_s27 = scalar_lea.hbm %s1695_s5, 2048 }
  0x15   :  { %s61_s24 = sshll.u32 %s1502_s23, 4  ;;  %p1382_p8 = scmp.ne.s32.totalorder %s1695_s5, %s1381_s27  ;;  %s62_s24 = int_to_ptr.vmem [resolvable:$true] %s61_s24 }
  0x16   :  { %p1385_p9 = scmp.lt.u32.totalorder %s1381_s27, %s1695_s5 }
  0x18   :  { %p1387_p10 = pnand %p1385_p9, %p1382_p8 }
  0x1a   :  { %1390 = shalt.err (!%p1387_p10)
}
  0x1b   :  { %s1391_s12 = scalar_lea.vmem %s62_s24, 2048  ;;  %p1396_p12 = scmp.lt.s32.totalorder %s62_s24, %s62_s24 }
  0x1c   :  { %p1392_p11 = scmp.ne.s32.totalorder %s62_s24, %s1391_s12  ;;  %p1397_p13 = scmp.lt.s32.totalorder %s1391_s12, %s1391_s12 }
  0x1e   :  { %p1398_p0 = por %p1397_p13, %p1396_p12 }
  0x20   :  { %p1399_p1 = pnand %p1398_p0, %p1392_p11 }
  0x22   :  { %1402 = shalt.err (!%p1399_p1)
}
  0x23   :  { %s1503_s1 = smov 64   ;;  %s1504_s10 = smov 4  }
  0x24   :  { %67 = dma.hbm_to_vmem [thread:$0]  %s1695_s5, 2048, %s62_s24, [#allocation9], %s1503_s1, %s1503_s1, %s1504_s10  }
  0x25   :  { %s1505_s15 = smov [#allocation2]   ;;  %s1506_s17 = smov [#allocation7]  }
  0x26   :  { %s24_s16 = sshll.u32 %s1505_s15, 4  ;;  %s47_s18 = sshll.u32 %s1506_s17, 4  ;;  %s25_s16 = int_to_ptr.vmem [resolvable:$true] %s24_s16  ;;  %s1591_s18 = int_to_ptr.vmem [resolvable:$true] %s47_s18 }
  0x27   :  { %s1403_s21 = scalar_lea.hbm %s1690_s0, 128 }
  0x28   :  { %p1404_p2 = scmp.ne.s32.totalorder %s1690_s0, %s1403_s21  ;;  %p1407_p3 = scmp.lt.u32.totalorder %s1403_s21, %s1690_s0 }
  0x2a   :  { %p1409_p4 = pnand %p1407_p3, %p1404_p2 }
  0x2c   :  { %1412 = shalt.err (!%p1409_p4)
}
  0x2d   :  { %s1413_s5 = scalar_lea.vmem %s25_s16, 128  ;;  %p1418_p6 = scmp.lt.s32.totalorder %s25_s16, %s25_s16 }
  0x2e   :  { %p1414_p5 = scmp.ne.s32.totalorder %s25_s16, %s1413_s5  ;;  %p1419_p7 = scmp.lt.s32.totalorder %s1413_s5, %s1413_s5 }
  0x30   :  { %p1420_p8 = por %p1419_p7, %p1418_p6 }
  0x32   :  { %p1421_p9 = pnand %p1420_p8, %p1414_p5 }
  0x34   :  { %1424 = shalt.err (!%p1421_p9)
}
  0x35   :  { %27 = dma.hbm_to_vmem [thread:$0]  %s1690_s0, 128, %s25_s16, [#allocation3]  }
  0x36   :  { %s1425_s30 = scalar_lea.hbm %s1693_s3, 8192 }
  0x37   :  { %p1426_p10 = scmp.ne.s32.totalorder %s1693_s3, %s1425_s30  ;;  %p1429_p11 = scmp.lt.u32.totalorder %s1425_s30, %s1693_s3 }
  0x39   :  { %p1431_p12 = pnand %p1429_p11, %p1426_p10 }
  0x3b   :  { %1434 = shalt.err (!%p1431_p12)
}
  0x3c   :  { %s1435_s15 = scalar_lea.vmem %s1591_s18, 8192  ;;  %p1440_p0 = scmp.lt.s32.totalorder %s1591_s18, %s1591_s18 }
  0x3d   :  { %p1436_p13 = scmp.ne.s32.totalorder %s1591_s18, %s1435_s15  ;;  %p1441_p1 = scmp.lt.s32.totalorder %s1435_s15, %s1435_s15 }
  0x3f   :  { %p1442_p2 = por %p1441_p1, %p1440_p0 }
  0x41   :  { %p1443_p3 = pnand %p1442_p2, %p1436_p13 }
  0x43   :  { %1446 = shalt.err (!%p1443_p3)
}
  0x44   :  { %s1507_s0 = smov 128   ;;  %s1508_s16 = smov 8  }
  0x45   :  { %53 = dma.hbm_to_vmem [thread:$0]  %s1693_s3, 8192, %s1591_s18, [#allocation6], %s1507_s0, %s1507_s0, %s1508_s16  }
  0x46   :  { %s1509_s20 = smov [#allocation10]   ;;  %s1447_s25 = scalar_lea.hbm %s1697_s7, 1024 }
  0x47   :  { %s75_s21 = sshll.u32 %s1509_s20, 4  ;;  %p1448_p4 = scmp.ne.s32.totalorder %s1697_s7, %s1447_s25  ;;  %s76_s21 = int_to_ptr.vmem [resolvable:$true] %s75_s21 }
  0x48   :  { %p1451_p5 = scmp.lt.u32.totalorder %s1447_s25, %s1697_s7 }
  0x4a   :  { %p1453_p6 = pnand %p1451_p5, %p1448_p4 }
  0x4c   :  { %1456 = shalt.err (!%p1453_p6)
}
  0x4d   :  { %s1457_s28 = scalar_lea.vmem %s76_s21, 1024  ;;  %p1462_p8 = scmp.lt.s32.totalorder %s76_s21, %s76_s21 }
  0x4e   :  { %p1458_p7 = scmp.ne.s32.totalorder %s76_s21, %s1457_s28  ;;  %p1463_p9 = scmp.lt.s32.totalorder %s1457_s28, %s1457_s28 }
  0x50   :  { %p1464_p10 = por %p1463_p9, %p1462_p8 }
  0x52   :  { %p1465_p11 = pnand %p1464_p10, %p1458_p7 }
  0x54   :  { %1468 = shalt.err (!%p1465_p11)
}
  0x55   :  { %81 = dma.hbm_to_vmem [thread:$0]  %s1697_s7, 1024, %s76_s21, [#allocation9], %s1503_s1, %s1503_s1, %s1504_s10  }
  0x56   :  { %1491 = dma.done.wait [#allocation3], 128  }
  0x57   :  { %1492 = vsyncadd [#allocation3], 4294967168 }
  0x58   :  { %1493 = dma.done.wait [#allocation6], 8960  }
  0x59   :  { %1494 = vsyncadd [#allocation6], 4294958336 }
  0x5a   :  { %1495 = dma.done.wait [#allocation9], 3072  }
  0x5b   :  { %1496 = vsyncadd [#allocation9], 4294964224  ;;  %v1510_v0 = vmov 0   ;;  %v1229_v1 = vld [vmem:[#allocation5 + $0x4] ss:$16 sps:$4 sm:$0xff]   ;;  %vm164_vm0 = vcmask 1043456   ;;  %v110_v60 = vlaneseq }
  0x5c   :  { %209 = vmatprep.mubr.bf16.mxu1 %v1510_v0  ;;  %v1231_v2 = vld [vmem:[#allocation5] ss:$16 sps:$4 sm:$0xff]   ;;  %177 = vmatprep.subr.bf16.mxu1 %v1229_v1  ;;  %v100_v6 = vld [vmem:[#allocation2] sm:$0xff]  ;;  %v107_v8 = vld [vmem:[#allocation5 + $0x28] sm:$0xff]  ;;  %vm160_vm1 = vcmask 195584   ;;  %vm1512_vm2 = vmmov 0  }
  0x5d   :  { %v106_v3 = vld [vmem:[#allocation5 + $0x20] sm:$0xff]  ;;  %178 = vmatpush1.bf16.msra.mxu1 %v1231_v2  ;;  %v1236_v7 = vld [vmem:[#allocation5 + $0xc] ss:$16 sps:$4 sm:$0xff]   ;;  %v1241_v11 = vld [vmem:[#allocation7] ss:$8 sps:$4 sm:$0xff]   ;;  %v101_v13 = vpack.c.bf16 %v100_v6, %v100_v6  ;;  %v1062_v15 = vcombine.high %v107_v8, %v107_v8  ;;  %v1061_v16 = vcombine.low %v107_v8, %v107_v8  ;;  %v1643_v61 = vshrl.u32 %v110_v60, 7 }
  0x5e   :  { %v1060_v4 = vcombine.high %v106_v3, %v106_v3  ;;  %v1059_v5 = vcombine.low %v106_v3, %v106_v3  ;;  %v1239_v10 = vld [vmem:[#allocation7 + $0x4] ss:$8 sps:$4 sm:$0xff]   ;;  %v1242_v12 = vld [vmem:[#allocation7 + $0x14] ss:$8 sps:$4 sm:$0xff]   ;;  %v1234_v14 = vld [vmem:[#allocation5 + $0x8] ss:$16 sps:$4 sm:$0xff]  }
  0x5f   :  { %663 = vmatprep.subr.bf16.mxu0 %v1239_v10  ;;  %v1244_v17 = vld [vmem:[#allocation7 + $0x10] ss:$8 sps:$4 sm:$0xff]   ;;  %v1245_v18 = vld [vmem:[#allocation7 + $0x24] ss:$8 sps:$4 sm:$0xff]   ;;  %v172_v19 = vsel %vm164_vm0, %v1061_v16, 0  ;;  %v112_v62 = vsub.s32 0, %v1643_v61 }
  0x60   :  { %1063 = vmatprep.subr.msk.bf16.mxu1 %vm164_vm0, %v1060_v4  ;;  %v166_v9 = vsel %vm164_vm0, %v1059_v5, 0  ;;  %664 = vmatpush1.bf16.msra.mxu0 %v1241_v11  ;;  %v1247_v20 = vld [vmem:[#allocation7 + $0x20] ss:$8 sps:$4 sm:$0xff]   ;;  %v1248_v21 = vld [vmem:[#allocation7 + $0x34] ss:$8 sps:$4 sm:$0xff]   ;;  %v124_v8 = vsub.s32 3, %v1643_v61 }
  0x61   :  { %180 = vmatpush1.bf16.msra.mxu1 %v166_v9  ;;  %665 = vmatprep.subr.bf16.mxu0 %v1242_v12  ;;  %v1250_v22 = vld [vmem:[#allocation7 + $0x30] ss:$8 sps:$4 sm:$0xff]   ;;  %v1251_v23 = vld [vmem:[#allocation7 + $0x44] ss:$8 sps:$4 sm:$0xff]   ;;  %v1253_v24 = vld [vmem:[#allocation7 + $0x40] ss:$8 sps:$4 sm:$0xff]  }
  0x62   :  { %218 = vmatprep.subr.bf16.mxu1 %v1236_v7  ;;  %v1254_v25 = vld [vmem:[#allocation7 + $0x54] ss:$8 sps:$4 sm:$0xff]   ;;  %v1256_v26 = vld [vmem:[#allocation7 + $0x50] ss:$8 sps:$4 sm:$0xff]   ;;  %v1257_v27 = vld [vmem:[#allocation7 + $0x64] ss:$8 sps:$4 sm:$0xff]  }
  0x63   :  { %v1259_v28 = vld [vmem:[#allocation7 + $0x60] ss:$8 sps:$4 sm:$0xff]   ;;  %v1260_v29 = vld [vmem:[#allocation7 + $0x74] ss:$8 sps:$4 sm:$0xff]   ;;  %v1262_v30 = vld [vmem:[#allocation7 + $0x70] ss:$8 sps:$4 sm:$0xff]  }
  0x64   :  { %1064 = vmatmul.mubr.msk.bf16.vlgmr.msra.gmra.mrb[0].mxu1 %vm160_vm1, %v101_v13  ;;  %666 = vmatpush1.bf16.msra.mxu0 %v1244_v17  ;;  %v1263_v31 = vld [vmem:[#allocation7 + $0x84] ss:$8 sps:$4 sm:$0xff]   ;;  %v1265_v32 = vld [vmem:[#allocation7 + $0x80] ss:$8 sps:$4 sm:$0xff]   ;;  %v1266_v33 = vld [vmem:[#allocation7 + $0x94] ss:$8 sps:$4 sm:$0xff]  }
  0x65   :  { %219 = vmatpush1.bf16.msra.mxu1 %v1234_v14  ;;  %250 = vmatprep.mubr.bf16.mxu1 %v1510_v0  ;;  %v1268_v34 = vld [vmem:[#allocation7 + $0x90] ss:$8 sps:$4 sm:$0xff]   ;;  %v1269_v35 = vld [vmem:[#allocation7 + $0xa4] ss:$8 sps:$4 sm:$0xff]   ;;  %v1271_v36 = vld [vmem:[#allocation7 + $0xa0] ss:$8 sps:$4 sm:$0xff]  }
  0x66   :  { %1065 = vmatprep.subr.msk.bf16.mxu1 %vm164_vm0, %v1062_v15  ;;  %667 = vmatprep.subr.bf16.mxu0 %v1245_v18  ;;  %v1272_v37 = vld [vmem:[#allocation7 + $0xb4] ss:$8 sps:$4 sm:$0xff]   ;;  %v1274_v38 = vld [vmem:[#allocation7 + $0xb0] ss:$8 sps:$4 sm:$0xff]   ;;  %v1275_v39 = vld [vmem:[#allocation7 + $0xc4] ss:$8 sps:$4 sm:$0xff]  }
  0x67   :  { %v1277_v40 = vld [vmem:[#allocation7 + $0xc0] ss:$8 sps:$4 sm:$0xff]   ;;  %v1278_v41 = vld [vmem:[#allocation7 + $0xd4] ss:$8 sps:$4 sm:$0xff]   ;;  %v1280_v42 = vld [vmem:[#allocation7 + $0xd0] ss:$8 sps:$4 sm:$0xff]  }
  0x68   :  { %668 = vmatpush1.bf16.msra.mxu0 %v1247_v20  ;;  %v1281_v43 = vld [vmem:[#allocation7 + $0xe4] ss:$8 sps:$4 sm:$0xff]   ;;  %v1283_v44 = vld [vmem:[#allocation7 + $0xe0] ss:$8 sps:$4 sm:$0xff]   ;;  %v1284_v45 = vld [vmem:[#allocation7 + $0xf4] ss:$8 sps:$4 sm:$0xff]  }
  0x69   :  { %221 = vmatpush1.bf16.msra.mxu1 %v172_v19  ;;  %669 = vmatprep.subr.bf16.mxu0 %v1248_v21  ;;  %v1286_v46 = vld [vmem:[#allocation7 + $0xf0] ss:$8 sps:$4 sm:$0xff]   ;;  %v1289_v47 = vld [vmem:[#allocation7 + $0x104] ss:$8 sps:$4 sm:$0xff]   ;;  %v1649_v63 = vld [vmem:[%s1692_s2] sm:$0xf] }
  0x6a   :  { %v1335_v48 = vld [vmem:[#allocation8 + $0x40] sm:$0xff]   ;;  %v1337_v50 = vld [vmem:[#allocation8 + $0x48] sm:$0xff]   ;;  %v1339_v52 = vld [vmem:[#allocation8 + $0x50] sm:$0xff]   ;;  %v116_v0 = vsub.s32 1, %v1643_v61  ;;  %v113_v1 = vrot.slane %v1649_v63, %v112_v62  ;;  %v125_v14 = vrot.slane %v1649_v63, %v124_v8  ;;  %s1513_s12 = smov [#allocation11]  }
  0x6b   :  { %v1336_v49 = vld [vmem:[#allocation8] sm:$0xff]   ;;  %1157 = vmatprep.subr.bf16.mxu1 %v1335_v48  ;;  %v1338_v51 = vld [vmem:[#allocation8 + $0x8] sm:$0xff]   ;;  %v1340_v53 = vld [vmem:[#allocation8 + $0x10] sm:$0xff]   ;;  %s1044_s13 = sshll.u32 %s1513_s12, 4  ;;  %s1045_s13 = int_to_ptr.vmem [resolvable:$true] %s1044_s13 }
  0x6c   :  { %1066 = vmatmul.mubr.msk.bf16.vlgmr.msra.gmra.mrb[4].mxu1 %vm160_vm1, %v101_v13  ;;  %670 = vmatpush1.bf16.msra.mxu0 %v1250_v22  ;;  %v1341_v54 = vld [vmem:[#allocation8 + $0x58] sm:$0xff]   ;;  %v1343_v56 = vld [vmem:[#allocation8 + $0x60] sm:$0xff]   ;;  %v1345_v58 = vld [vmem:[#allocation8 + $0x68] sm:$0xff]   ;;  %v117_v2 = vrot.slane %v1649_v63, %v116_v0  ;;  %p1474_p13 = scmp.lt.s32.totalorder %s1045_s13, %s1045_s13 }
  0x6d   :  { %671 = vmatprep.subr.bf16.mxu0 %v1251_v23  ;;  %1158 = vmatpush3.bf16.msra.mxu1 %v1336_v49  ;;  %v1342_v55 = vld [vmem:[#allocation8 + $0x18] sm:$0xff]   ;;  %v1344_v57 = vld [vmem:[#allocation8 + $0x20] sm:$0xff]   ;;  %v1346_v59 = vld [vmem:[#allocation8 + $0x28] sm:$0xff]  }
  0x6e   :  { %1159 = vmatprep.subr.bf16.mxu1 %v1337_v50  ;;  %v1287_v13 = vld [vmem:[#allocation7 + $0x100] ss:$8 sps:$4 sm:$0xff]   ;;  %v1292_v16 = vld [vmem:[#allocation7 + $0x114] ss:$8 sps:$4 sm:$0xff]   ;;  %v1290_v19 = vld [vmem:[#allocation7 + $0x110] ss:$8 sps:$4 sm:$0xff]  }
  0x6f   :  { %v1295_v22 = vld [vmem:[#allocation7 + $0x124] ss:$8 sps:$4 sm:$0xff]   ;;  %v1328_v48 = vld [vmem:[#allocation7 + $0x1d4] ss:$8 sps:$4 sm:$0xff]   ;;  %v1326_v49 = vld [vmem:[#allocation7 + $0x1d0] ss:$8 sps:$4 sm:$0xff]  }
  0x70   :  { %672 = vmatpush1.bf16.msra.mxu0 %v1253_v24  ;;  %v1349_v60 = vld [vmem:[#allocation8 + $0x78] sm:$0xff]  }
  0x71   :  { %673 = vmatprep.subr.bf16.mxu0 %v1254_v25  ;;  %1160 = vmatpush3.bf16.msra.mxu1 %v1338_v51  ;;  %v1293_v25 = vld [vmem:[#allocation7 + $0x120] ss:$8 sps:$4 sm:$0xff]   ;;  %v1331_v51 = vld [vmem:[#allocation7 + $0x1e4] ss:$8 sps:$4 sm:$0xff]  }
  0x72   :  { %1161 = vmatprep.subr.bf16.mxu1 %v1339_v52  ;;  %v1329_v52 = vld [vmem:[#allocation7 + $0x1e0] ss:$8 sps:$4 sm:$0xff]  }
  0x74   :  { %674 = vmatpush1.bf16.msra.mxu0 %v1256_v26 }
  0x75   :  { %675 = vmatprep.subr.bf16.mxu0 %v1257_v27  ;;  %1162 = vmatpush3.bf16.msra.mxu1 %v1340_v53  ;;  %v1298_v27 = vld [vmem:[#allocation7 + $0x134] ss:$8 sps:$4 sm:$0xff]  }
  0x76   :  { %1163 = vmatprep.subr.bf16.mxu1 %v1341_v54  ;;  %v1334_v54 = vld [vmem:[#allocation7 + $0x1f4] ss:$8 sps:$4 sm:$0xff]  }
  0x78   :  { %676 = vmatpush1.bf16.msra.mxu0 %v1259_v28  ;;  %v1296_v28 = vld [vmem:[#allocation7 + $0x130] ss:$8 sps:$4 sm:$0xff]  }
  0x79   :  { %677 = vmatprep.subr.bf16.mxu0 %v1260_v29  ;;  %1164 = vmatpush3.bf16.msra.mxu1 %v1342_v55  ;;  %v1301_v29 = vld [vmem:[#allocation7 + $0x144] ss:$8 sps:$4 sm:$0xff]   ;;  %v1332_v55 = vld [vmem:[#allocation7 + $0x1f0] ss:$8 sps:$4 sm:$0xff]  }
  0x7a   :  { %1165 = vmatprep.subr.bf16.mxu1 %v1343_v56 }
  0x7c   :  { %678 = vmatpush1.bf16.msra.mxu0 %v1262_v30  ;;  %v1299_v30 = vld [vmem:[#allocation7 + $0x140] ss:$8 sps:$4 sm:$0xff]  }
  0x7d   :  { %679 = vmatprep.subr.bf16.mxu0 %v1263_v31  ;;  %1166 = vmatpush3.bf16.msra.mxu1 %v1344_v57  ;;  %v1304_v31 = vld [vmem:[#allocation7 + $0x154] ss:$8 sps:$4 sm:$0xff]  }
  0x7e   :  { %1167 = vmatprep.subr.bf16.mxu1 %v1345_v58  ;;  %v1347_v58 = vld [vmem:[#allocation8 + $0x70] sm:$0xff]  }
  0x80   :  { %680 = vmatpush1.bf16.msra.mxu0 %v1265_v32  ;;  %v1302_v32 = vld [vmem:[#allocation7 + $0x150] ss:$8 sps:$4 sm:$0xff]  }
  0x81   :  { %681 = vmatprep.subr.bf16.mxu0 %v1266_v33  ;;  %1168 = vmatpush3.bf16.msra.mxu1 %v1346_v59  ;;  %v1307_v33 = vld [vmem:[#allocation7 + $0x164] ss:$8 sps:$4 sm:$0xff]   ;;  %v1348_v59 = vld [vmem:[#allocation8 + $0x30] sm:$0xff]  }
  0x82   :  { %1169 = vmatprep.subr.bf16.mxu1 %v1347_v58 }
  0x84   :  { %682 = vmatpush1.bf16.msra.mxu0 %v1268_v34  ;;  %v1305_v34 = vld [vmem:[#allocation7 + $0x160] ss:$8 sps:$4 sm:$0xff]  }
  0x85   :  { %683 = vmatprep.subr.bf16.mxu0 %v1269_v35  ;;  %v1310_v35 = vld [vmem:[#allocation7 + $0x174] ss:$8 sps:$4 sm:$0xff]   ;;  %1170 = vmatpush3.bf16.msra.mxu1 %v1348_v59 }
  0x86   :  { %1171 = vmatprep.subr.bf16.mxu1 %v1349_v60 }
  0x88   :  { %684 = vmatpush1.bf16.msra.mxu0 %v1271_v36  ;;  %v1308_v36 = vld [vmem:[#allocation7 + $0x170] ss:$8 sps:$4 sm:$0xff]  }
  0x89   :  { %685 = vmatprep.subr.bf16.mxu0 %v1272_v37  ;;  %v1313_v37 = vld [vmem:[#allocation7 + $0x184] ss:$8 sps:$4 sm:$0xff]  }
  0x8c   :  { %686 = vmatpush1.bf16.msra.mxu0 %v1274_v38  ;;  %v1311_v38 = vld [vmem:[#allocation7 + $0x180] ss:$8 sps:$4 sm:$0xff]  }
  0x8d   :  { %687 = vmatprep.subr.bf16.mxu0 %v1275_v39  ;;  %v1316_v39 = vld [vmem:[#allocation7 + $0x194] ss:$8 sps:$4 sm:$0xff]  }
  0x90   :  { %688 = vmatpush1.bf16.msra.mxu0 %v1277_v40  ;;  %v1314_v40 = vld [vmem:[#allocation7 + $0x190] ss:$8 sps:$4 sm:$0xff]  }
  0x91   :  { %689 = vmatprep.subr.bf16.mxu0 %v1278_v41  ;;  %v1319_v41 = vld [vmem:[#allocation7 + $0x1a4] ss:$8 sps:$4 sm:$0xff]  }
  0x94   :  { %690 = vmatpush1.bf16.msra.mxu0 %v1280_v42  ;;  %v1317_v42 = vld [vmem:[#allocation7 + $0x1a0] ss:$8 sps:$4 sm:$0xff]  }
  0x95   :  { %691 = vmatprep.subr.bf16.mxu0 %v1281_v43  ;;  %v1322_v43 = vld [vmem:[#allocation7 + $0x1b4] ss:$8 sps:$4 sm:$0xff]  }
  0x98   :  { %692 = vmatpush1.bf16.msra.mxu0 %v1283_v44  ;;  %v1320_v44 = vld [vmem:[#allocation7 + $0x1b0] ss:$8 sps:$4 sm:$0xff]  }
  0x99   :  { %693 = vmatprep.subr.bf16.mxu0 %v1284_v45  ;;  %v1325_v45 = vld [vmem:[#allocation7 + $0x1c4] ss:$8 sps:$4 sm:$0xff]  }
  0x9c   :  { %694 = vmatpush1.bf16.msra.mxu0 %v1286_v46  ;;  %v1323_v46 = vld [vmem:[#allocation7 + $0x1c0] ss:$8 sps:$4 sm:$0xff]  }
  0x9d   :  { %704 = vmatprep.subr.bf16.mxu0 %v1289_v47  ;;  %v120_v47 = vsub.s32 2, %v1643_v61  ;;  %v1354_v61 = vld [vmem:[#allocation10 + $0x18] sm:$0xff]  }
  0x9f   :  { %v121_v50 = vrot.slane %v1649_v63, %v120_v47  ;;  %v1350_v63 = vld [vmem:[#allocation8 + $0x38] sm:$0xff]  }
  0xa0   :  { %1172 = vmatpush3.bf16.msra.mxu1 %v1350_v63 }
 0x137   :  { %v211_v3 = vpop.f32.mrb[0].mxu1 }
 0x138   :  { %v212_v4 = vadd.f32 %v211_v3, %v113_v1  ;;  %v213_v5 = vpop.f32.mrb[1].mxu1  ;;  %v1511_v1 = vmov 0.0  }
 0x139   :  { %v214_v6 = vadd.f32 %v213_v5, %v117_v2  ;;  %v215_v7 = vpop.f32.mrb[2].mxu1  ;;  %1188 = vmatprep.subr.bf16.mxu1 %v1511_v1  ;;  %v331_v2 = vld [vmem:[%s1694_s4] sm:$0x3] }
 0x13a   :  { %v259_v9 = vmax.f32 %v212_v4, 0.0  ;;  %v216_v10 = vpop.f32.mrb[3].mxu1  ;;  %v336_v3 = vrot.slane %v331_v2, %v112_v62  ;;  %v340_v4 = vrot.slane %v331_v2, %v116_v0  ;;  %v1353_v62 = vld [vmem:[#allocation10 + $0x10] sm:$0xff]   ;;  %v1355_v0 = vld [vmem:[#allocation10 + $0x20] sm:$0xff]  }
 0x13b   :  { %v260_v11 = vmax.f32 %v214_v6, 0.0 }
 0x13c   :  { %v263_v15 = vpack.c.bf16 %v259_v9, %v259_v9 }
 0x13d   :  { %v264_v12 = vpack.c.bf16 %v260_v11, %v260_v11 }
 0x13f   :  { %695 = vmatprep.mubr.bf16.mxu0 %v264_v12  ;;  %v1660_v17 = vpop.f32.mrb[4].mxu1 }
 0x140   :  { %696 = vmatmul.mubr.bf16.vlgmr.msra.gmra.mrb[0].mxu0 %v263_v15  ;;  %v254_v18 = vpop.f32.mrb[5].mxu1  ;;  %v253_v53 = vadd.f32 %v1660_v17, %v121_v50  ;;  %v1356_v17 = vld [vmem:[#allocation10 + $0x28] sm:$0xff]  }
 0x141   :  { %705 = vmatpush1.bf16.msra.mxu0 %v1287_v13  ;;  %v255_v20 = vadd.f32 %v254_v18, %v125_v14  ;;  %v256_v21 = vpop.f32.mrb[6].mxu1  ;;  %v1351_v14 = vld [vmem:[#allocation10] sm:$0xff]   ;;  %v1357_v18 = vld [vmem:[#allocation10 + $0x30] sm:$0xff]  }
 0x142   :  { %706 = vmatprep.subr.bf16.mxu0 %v1292_v16  ;;  %v257_v23 = vpop.f32.mrb[7].mxu1  ;;  %v261_v56 = vmax.f32 %v253_v53, 0.0  ;;  %v1352_v16 = vld [vmem:[#allocation10 + $0x8] sm:$0xff]  }
 0x143   :  { %v262_v24 = vmax.f32 %v255_v20, 0.0  ;;  %v1131_v21 = vld [vmem:[%s1696_s6] ss:$0 sm:$0xff]  ;;  %s1469_s6 = scalar_lea.vmem %s1045_s13, 128 }
 0x144   :  { %v265_v57 = vpack.c.bf16 %v261_v56, %v261_v56  ;;  %p1470_p12 = scmp.ne.s32.totalorder %s1045_s13, %s1469_s6  ;;  %p1475_p0 = scmp.lt.s32.totalorder %s1469_s6, %s1469_s6 }
 0x145   :  { %707 = vmatpush1.bf16.msra.mxu0 %v1290_v19  ;;  %v266_v26 = vpack.c.bf16 %v262_v24, %v262_v24  ;;  %v1358_v19 = vld [vmem:[#allocation10 + $0x38] sm:$0xff]  }
 0x146   :  { %708 = vmatprep.subr.bf16.mxu0 %v1295_v22  ;;  %p1476_p1 = por %p1475_p0, %p1474_p13 }
 0x147   :  { %736 = vmatprep.mubr.bf16.mxu0 %v266_v26 }
 0x148   :  { %p1477_p2 = pnand %p1476_p1, %p1470_p12 }
 0x149   :  { %709 = vmatpush1.bf16.msra.mxu0 %v1293_v25 }
 0x14a   :  { %710 = vmatprep.subr.bf16.mxu0 %v1298_v27 }
 0x14d   :  { %711 = vmatpush1.bf16.msra.mxu0 %v1296_v28 }
 0x14e   :  { %712 = vmatprep.subr.bf16.mxu0 %v1301_v29  ;;  %v1148_v29 = vld [vmem:[%s1698_s8] ss:$0 sm:$0xff] }
 0x151   :  { %713 = vmatpush1.bf16.msra.mxu0 %v1299_v30 }
 0x152   :  { %714 = vmatprep.subr.bf16.mxu0 %v1304_v31 }
 0x155   :  { %715 = vmatpush1.bf16.msra.mxu0 %v1302_v32 }
 0x156   :  { %716 = vmatprep.subr.bf16.mxu0 %v1307_v33 }
 0x159   :  { %717 = vmatpush1.bf16.msra.mxu0 %v1305_v34 }
 0x15a   :  { %718 = vmatprep.subr.bf16.mxu0 %v1310_v35 }
 0x15d   :  { %719 = vmatpush1.bf16.msra.mxu0 %v1308_v36 }
 0x15e   :  { %720 = vmatprep.subr.bf16.mxu0 %v1313_v37 }
 0x161   :  { %721 = vmatpush1.bf16.msra.mxu0 %v1311_v38 }
 0x162   :  { %722 = vmatprep.subr.bf16.mxu0 %v1316_v39 }
 0x165   :  { %723 = vmatpush1.bf16.msra.mxu0 %v1314_v40 }
 0x166   :  { %724 = vmatprep.subr.bf16.mxu0 %v1319_v41 }
 0x169   :  { %725 = vmatpush1.bf16.msra.mxu0 %v1317_v42 }
 0x16a   :  { %726 = vmatprep.subr.bf16.mxu0 %v1322_v43 }
 0x16d   :  { %727 = vmatpush1.bf16.msra.mxu0 %v1320_v44 }
 0x16e   :  { %728 = vmatprep.subr.bf16.mxu0 %v1325_v45 }
 0x171   :  { %729 = vmatpush1.bf16.msra.mxu0 %v1323_v46 }
 0x172   :  { %730 = vmatprep.subr.bf16.mxu0 %v1328_v48 }
 0x175   :  { %731 = vmatpush1.bf16.msra.mxu0 %v1326_v49 }
 0x176   :  { %732 = vmatprep.subr.bf16.mxu0 %v1331_v51 }
 0x179   :  { %733 = vmatpush1.bf16.msra.mxu0 %v1329_v52 }
 0x17a   :  { %734 = vmatprep.subr.bf16.mxu0 %v1334_v54 }
 0x17d   :  { %735 = vmatpush1.bf16.msra.mxu0 %v1332_v55 }
 0x180   :  { %737 = vmatmul.mubr.bf16.vlgmr.msra.gmra.mrb[0].mxu0 %v265_v57 }
 0x253   :  { %v738_v5 = vpop.f32.mrb[0].mxu0 }
 0x254   :  { %v1208_v6 = vadd.f32 %v738_v5, %v336_v3  ;;  %v740_v7 = vpop.f32.mrb[1].mxu0 }
 0x255   :  { %v1209_v8 = vadd.f32 %v740_v7, %v340_v4  ;;  %v742_v9 = vpop.f32.mrb[2].mxu0 }
 0x256   :  { %v745_v10 = vmax.f32 %v1208_v6, 0.0  ;;  %v743_v11 = vpop.f32.mrb[3].mxu0 }
 0x257   :  { %v746_v12 = vmax.f32 %v1209_v8, 0.0 }
 0x258   :  { %v747_v15 = vpack.c.bf16 %v745_v10, %v745_v10 }
 0x259   :  { %v748_v13 = vpack.c.bf16 %v746_v12, %v746_v12 }
 0x25b   :  { %916 = vmatprep.mubr.bf16.mxu1 %v748_v13 }
 0x25c   :  { %917 = vmatmul.mubr.bf16.vlgmr.msra.gmra.mrb[8].mxu1 %v747_v15 }
 0x25d   :  { %1189 = vmatpush3.bf16.msra.mxu1 %v1351_v14  ;;  %1204 = vmatprep.mubr.msk.bf16.mxu1 %vm1512_vm2, %v1511_v1 }
 0x25e   :  { %1190 = vmatprep.subr.bf16.mxu1 %v1511_v1 }
 0x261   :  { %1191 = vmatpush3.bf16.msra.mxu1 %v1352_v16 }
 0x262   :  { %1192 = vmatprep.subr.bf16.mxu1 %v1511_v1 }
 0x265   :  { %1193 = vmatpush3.bf16.msra.mxu1 %v1353_v62 }
 0x266   :  { %1194 = vmatprep.subr.bf16.mxu1 %v1511_v1 }
 0x269   :  { %1195 = vmatpush3.bf16.msra.mxu1 %v1354_v61 }
 0x26a   :  { %1196 = vmatprep.subr.bf16.mxu1 %v1511_v1 }
 0x26d   :  { %1197 = vmatpush3.bf16.msra.mxu1 %v1355_v0 }
 0x26e   :  { %1198 = vmatprep.subr.bf16.mxu1 %v1511_v1 }
 0x271   :  { %1199 = vmatpush3.bf16.msra.mxu1 %v1356_v17 }
 0x272   :  { %1200 = vmatprep.subr.bf16.mxu1 %v1511_v1 }
 0x275   :  { %1201 = vmatpush3.bf16.msra.mxu1 %v1357_v18 }
 0x276   :  { %1202 = vmatprep.subr.bf16.mxu1 %v1511_v1 }
 0x279   :  { %1203 = vmatpush3.bf16.msra.mxu1 %v1358_v19 }
 0x32f   :  { %v1173_v20 = vpop.f32.mrb[8].mxu1 }
 0x330   :  { %v1174_v22 = vpop.f32.mrb[9].mxu1 }
 0x331   :  { %v1175_v23 = vadd.f32 %v1174_v22, %v1173_v20  ;;  %v1176_v24 = vpop.f32.mrb[10].mxu1 }
 0x332   :  { %v1177_v25 = vpop.f32.mrb[11].mxu1 }
 0x333   :  { %v919_v26 = vadd.f32 %v1175_v23, %v1131_v21 }
 0x335   :  { %v924_v27 = vmax.f32 %v919_v26, 0.0 }
 0x337   :  { %v925_v28 = vpack.c.bf16 %v924_v27, %v924_v27 }
 0x339   :  { %1205 = vmatmul.mubr.bf16.vlgmr.msra.gmra.mrb[12].mxu1 %v925_v28 }
 0x40c   :  { %v1031_v30 = vpop.f32.mrb[12].mxu1 }
 0x40d   :  { %v1032_v31 = vadd.f32 %v1148_v29, %v1031_v30  ;;  %v1206_v32 = vpop.f32.mrb[13].mxu1 }
 0x40e   :  { %v1034_v33 = vpop.f32.mrb[14].mxu1 }
 0x40f   :  { %1037 = vst [vmem:[#allocation11] sm:$0xff] %v1032_v31  ;;  %v1207_v34 = vpop.f32.mrb[15].mxu1 }
 0x410   :  { %1480 = shalt.err (!%p1477_p2)
}
 0x411   :  { %s1481_s8 = scalar_lea.hbm %s1699_s9, 128 }
 0x412   :  { %p1482_p3 = scmp.ne.s32.totalorder %s1699_s9, %s1481_s8  ;;  %p1485_p4 = scmp.lt.u32.totalorder %s1481_s8, %s1699_s9 }
 0x414   :  { %p1487_p5 = pnand %p1485_p4, %p1482_p3 }
 0x416   :  { %1490 = shalt.err (!%p1487_p5)
}
 0x417   :  { %1047 = dma.vmem_to_hbm [thread:$0]  %s1045_s13, 128, %s1699_s9, [#allocation4]  }
 0x418   :  { %1497 = dma.done.wait [#allocation4], 128  }
 0x419   :  { %1498 = vsyncadd [#allocation4], 4294967168 }
 0x41a   :  { %1051 = vsyncpa [#allocation3], 1 }
 0x41b   :  { %1052 = vsyncpa [#allocation6], 1 }
 0x41c   :  { %1053 = vsyncpa [#allocation9], 1 }
 0x41d   :  { %1054 = vsyncpa [#allocation4], 1 }

</bundles_post_ra>
